<compile_context>
chip_gen: v6e
topology: v6e:2x2x1
jax: 0.10.0
libtpu: 0.0.40
codegen_flags: <defaults>
</compile_context>

<pallas_src>
import functools

import jax
import jax.numpy as jnp
from jax.experimental import pallas as pl
from jax.experimental.pallas import tpu as pltpu

EPS = 1e-6        # GeM clamp eps
L2_EPS = 1e-12    # torch F.normalize eps


def _round_up(a, m):
    return ((a + m - 1) // m) * m


# ----------------------------- fused Pallas kernel -----------------------------

def _fused_kernel(x_ref, w_ref, b_ref, p_ref, o_ref, acc_ref, *,
                  HW, C_out, C_pad, tm, R, p_static):
    """One grid step = one batch element x one row-tile of flattened output positions.

    x_ref:   (1, tm, K_pad)  bf16  im2col rows (lane-dense, K-pad columns are zero)
    w_ref:   (K_pad, C_pad)  bf16  conv weights, pad rows/lanes zero
    b_ref:   (1, C_pad)      f32   bias, pad lanes zero
    p_ref:   (1, 1)          f32   GeM p (SMEM; unused when p_static is given)
    o_ref:   (1, 1, C_pad)   f32   L2-normalized GeM descriptor
    acc_ref: (1, C_pad)      f32   VMEM scratch: running sum of clamp(relu)^p
    """
    r = pl.program_id(1)
    num_r = pl.num_programs(1)

    @pl.when(r == 0)
    def _init():
        acc_ref[...] = jnp.zeros_like(acc_ref)

    # ---- conv3x3 "same": one lane-dense MXU matmul, f32 accumulate ----
    conv = jnp.dot(x_ref[0], w_ref[...], preferred_element_type=jnp.float32)
    act = jnp.maximum(jnp.maximum(conv + b_ref[...], 0.0), EPS)   # ReLU + GeM clamp

    # ---- act ** p (VPU fast path for the default p == 3) ----
    if p_static is not None and float(p_static) == 3.0:
        powed = act * act * act
    elif p_static is not None:
        powed = jnp.exp(float(p_static) * jnp.log(act))
    else:
        powed = jnp.exp(p_ref[0, 0] * jnp.log(act))

    # rows beyond H*W exist only if HW is not a multiple of tm (trace-time check)
    if R * tm != HW:
        row = jax.lax.broadcasted_iota(jnp.int32, (tm, 1), 0) + r * tm
        powed = powed * (row < HW).astype(jnp.float32)

    acc_ref[...] += jnp.sum(powed, axis=0, keepdims=True)

    # ---- finalize: spatial mean, ^(1/p), drop pad lanes, L2 normalize ----
    @pl.when(r == num_r - 1)
    def _finalize():
        mean = acc_ref[...] * (1.0 / HW)
        if p_static is not None:
            inv_p = 1.0 / float(p_static)
        else:
            inv_p = 1.0 / p_ref[0, 0]
        pooled = jnp.exp(jnp.log(jnp.maximum(mean, 1e-35)) * inv_p)   # mean ** (1/p)
        if C_pad != C_out:
            lane = jax.lax.broadcasted_iota(jnp.int32, (1, C_pad), 1)
            pooled = jnp.where(lane < C_out, pooled, 0.0)             # exact-zero pad lanes
        ss = jnp.sum(pooled * pooled, axis=-1, keepdims=True)
        inv = jax.lax.rsqrt(jnp.maximum(ss, L2_EPS * L2_EPS))
        o_ref[0] = pooled * inv


# --------------------------------- JAX glue -------------------------------------

def basenet_forward(x_nchw, params, p_static=None):
    """BaseNet.forward for a (possibly concatenated) batch: backbone -> GeM -> L2."""
    w, b, p = params["w"], params["b"], params["p"]
    B, C_in, H, W = x_nchw.shape
    C_out = b.shape[0]
    HW = H * W
    K = 9 * C_in
    K_pad = _round_up(K, 128)                      # lane-dense contraction dim
    C_pad = _round_up(C_out, 128)                  # lane-dense output width

    # Row tile over flattened output positions; capped by vreg pressure, not VMEM.
    tm = _round_up(HW, 16) if HW <= 256 else 256
    HW_pad = _round_up(HW, tm)
    R = HW_pad // tm

    # Host-side im2col: NCHW -> NHWC -> spatial zero-pad -> 9 shifted views
    # concatenated along channels (order (dh, dw, c) matches the HWIO weight reshape).
    x = jnp.transpose(x_nchw, (0, 2, 3, 1))
    xp = jnp.pad(x, ((0, 0), (1, 1), (1, 1), (0, 0)))
    cols = [xp[:, di:di + H, dj:dj + W, :] for di in range(3) for dj in range(3)]
    patches = jnp.concatenate(cols, axis=-1).reshape(B, HW, K)
    patches = jnp.pad(patches,
                      ((0, 0), (0, HW_pad - HW), (0, K_pad - K))).astype(jnp.bfloat16)

    # conv weight (3,3,C_in,C_out) HWIO -> (K_pad, C_pad) bf16, zero-padded
    w_mat = jnp.pad(w.reshape(K, C_out),
                    ((0, K_pad - K), (0, C_pad - C_out))).astype(jnp.bfloat16)
    b_pad = jnp.pad(b, (0, C_pad - C_out)).reshape(1, C_pad).astype(jnp.float32)
    p_smem = jnp.reshape(p.astype(jnp.float32), (1, 1))

    kernel = functools.partial(_fused_kernel, HW=HW, C_out=C_out, C_pad=C_pad,
                               tm=tm, R=R, p_static=p_static)

    if p_static is not None and float(p_static) == 3.0:
        n_transc = 2 * B * C_pad
    else:
        n_transc = 2 * B * HW_pad * C_pad

    out = pl.pallas_call(
        kernel,
        out_shape=jax.ShapeDtypeStruct((B, 1, C_pad), jnp.float32),
        grid_spec=pltpu.PrefetchScalarGridSpec(
            num_scalar_prefetch=0,
            grid=(B, R),
            in_specs=[
                pl.BlockSpec((1, tm, K_pad), lambda bi, ri: (bi, ri, 0)),
                pl.BlockSpec((K_pad, C_pad), lambda bi, ri: (0, 0)),
                pl.BlockSpec((1, C_pad), lambda bi, ri: (0, 0)),
                pl.BlockSpec((1, 1), lambda bi, ri: (0, 0),
                             memory_space=pltpu.MemorySpace.SMEM),
            ],
            out_specs=pl.BlockSpec((1, 1, C_pad), lambda bi, ri: (bi, 0, 0)),
            scratch_shapes=[pltpu.VMEM((1, C_pad), jnp.float32)],
        ),
        compiler_params=pltpu.CompilerParams(
            dimension_semantics=("parallel", "arbitrary"),
        ),
        cost_estimate=pl.CostEstimate(
            flops=2 * B * HW_pad * K_pad * C_pad,
            transcendentals=n_transc,
            bytes_accessed=patches.size * 2 + w_mat.size * 2 + B * C_pad * 4,
        ),
    )(patches, w_mat, b_pad, p_smem)

    return out[:, 0, :C_out]


@functools.partial(jax.jit, static_argnames=("p_static",))
def siamese_forward(x0, x1, params, p_static=None):
    """Shared-weight Siamese forward: both branches batched into one kernel call."""
    x = jnp.concatenate([x0, x1], axis=0)
    out = basenet_forward(x, params, p_static=p_static)
    B = x0.shape[0]
    return out[:B], out[B:]


# ------------------------------ reference (pure JAX) -----------------------------

def reference_forward(x_nchw, params):
    """Pure-JAX reference with the same bf16 input quantization as the kernel."""
    w = params["w"].astype(jnp.bfloat16).astype(jnp.float32)
    b = params["b"].astype(jnp.float32)
    p = params["p"].astype(jnp.float32)
    x = jnp.transpose(x_nchw, (0, 2, 3, 1)).astype(jnp.bfloat16).astype(jnp.float32)
    y = jax.lax.conv_general_dilated(
        x, w, window_strides=(1, 1), padding="SAME",
        dimension_numbers=("NHWC", "HWIO", "NHWC"),
        precision=jax.lax.Precision.HIGHEST)
    y = jnp.maximum(y + b, 0.0)                              # conv + bias + ReLU
    y = jnp.maximum(y, EPS) ** p                             # GeM clamp ^ p
    pooled = jnp.mean(y, axis=(1, 2)) ** (1.0 / p)           # spatial avg ^ (1/p)
    nrm = jnp.sqrt(jnp.sum(pooled * pooled, axis=-1, keepdims=True))
    return pooled / jnp.maximum(nrm, L2_EPS)                 # F.normalize


# --------------------------------- parameters ------------------------------------

def init_params(c_in, c_out, key):
    kw, kb = jax.random.split(key)
    w = jax.random.normal(kw, (3, 3, c_in, c_out), jnp.float32) * 0.1   # HWIO
    b = jax.random.normal(kb, (c_out,), jnp.float32) * 0.01
    p = jnp.full((1,), 3.0, jnp.float32)                                # GeM p
    return {"w": w, "b": b, "p": p}


if __name__ == "__main__":
    key = jax.random.PRNGKey(0)
    k0, k1, kp = jax.random.split(key, 3)

    B, C_in, H, W = 2, 4, 16, 16
    C_out = 32

    x0 = jax.random.normal(k0, (B, C_in, H, W), jnp.float32)
    x1 = jax.random.normal(k1, (B, C_in, H, W), jnp.float32)
    params = init_params(C_in, C_out, kp)

    out0, out1 = siamese_forward(x0, x1, params, p_static=3.0)
    jax.block_until_ready((out0, out1))

    assert out0.shape == (B, C_out) and out1.shape == (B, C_out)
    # L2-normalized outputs must have unit norm per row
    assert jnp.allclose(jnp.linalg.norm(out0, axis=-1), 1.0, atol=1e-4)
    assert jnp.allclose(jnp.linalg.norm(out1, axis=-1), 1.0, atol=1e-4)
    # match the pure-JAX reference (same bf16 input quantization)
    ref0 = reference_forward(x0, params)
    ref1 = reference_forward(x1, params)
    assert jnp.allclose(out0, ref0, rtol=5e-3, atol=5e-4)
    assert jnp.allclose(out1, ref1, rtol=5e-3, atol=5e-4)
    print("KERNEL_OK")
</pallas_src>

<mosaic_0001>
module attributes {stable_mosaic.version = 11 : i64} {
  func.func @_fused_kernel(%arg0: i32, %arg1: i32, %arg2: memref<1x256x128xbf16, #tpu.memory_space<vmem>>, %arg3: memref<128x128xbf16, #tpu.memory_space<vmem>>, %arg4: memref<1x128xf32, #tpu.memory_space<vmem>>, %arg5: memref<1x1xf32, #tpu.memory_space<smem>>, %arg6: memref<1x1x128xf32, #tpu.memory_space<vmem>>, %arg7: memref<1x128xf32, #tpu.memory_space<vmem>>) attributes {dimension_semantics = [#tpu.dimension_semantics<parallel>, #tpu.dimension_semantics<arbitrary>], iteration_bounds = array<i64: 4, 1>, scalar_prefetch = 0 : i64, scratch_operands = 1 : i64, tpu.core_type = #tpu.core_type<tc>, window_params = [{transform_indices = @transform_0, window_bounds = array<i64: 1, 256, 128>}, {pipeline_mode = #tpu.pipeline_mode<synchronous>, transform_indices = @transform_1, window_bounds = array<i64: 128, 128>}, {pipeline_mode = #tpu.pipeline_mode<synchronous>, transform_indices = @transform_2, window_bounds = array<i64: 1, 128>}, {transform_indices = @transform_3, window_bounds = array<i64: 1, 1>}, {transform_indices = @transform_4, window_bounds = array<i64: 1, 1, 128>}]} {
    %c0_i32 = arith.constant 0 : i32
    %0 = arith.cmpi eq, %arg1, %c0_i32 : i32
    %1 = arith.extui %0 : i1 to i32
    %c0_i32_0 = arith.constant 0 : i32
    %2 = arith.cmpi ne, %1, %c0_i32_0 : i32
    scf.if %2 {
      %cst_16 = arith.constant 0.000000e+00 : f32
      %24 = vector.broadcast %cst_16 : f32 to vector<1x128xf32>
      %c0_17 = arith.constant 0 : index
      %c0_18 = arith.constant 0 : index
      %25 = vector.load %arg7[%c0_17, %c0_18] : memref<1x128xf32, #tpu.memory_space<vmem>>, vector<1x128xf32>
      tpu.vector_store %arg7[%c0_17, %c0_18], %24 {strides = array<i32>} : memref<1x128xf32, #tpu.memory_space<vmem>>, vector<1x128xf32>,
    } else {
    }
    %c0 = arith.constant 0 : index
    %c0_1 = arith.constant 0 : index
    %c0_2 = arith.constant 0 : index
    %3 = vector.load %arg2[%c0, %c0_1, %c0_2] : memref<1x256x128xbf16, #tpu.memory_space<vmem>>, vector<1x256x128xbf16>
    %4 = vector.shape_cast %3 : vector<1x256x128xbf16> to vector<256x128xbf16>
    %c0_3 = arith.constant 0 : index
    %c0_4 = arith.constant 0 : index
    %5 = vector.load %arg3[%c0_3, %c0_4] : memref<128x128xbf16, #tpu.memory_space<vmem>>, vector<128x128xbf16>
    %cst = arith.constant dense<0.000000e+00> : vector<256x128xf32>
    %6 = tpu.matmul %4, %5, %cst {dimension_numbers = #tpu.dot_dimension_numbers<[1], [0], [0], [1], [0, 0, 1, 1], [], []>} : vector<256x128xbf16>, vector<128x128xbf16>, vector<256x128xf32> -> vector<256x128xf32>
    %c0_5 = arith.constant 0 : index
    %c0_6 = arith.constant 0 : index
    %7 = vector.load %arg4[%c0_5, %c0_6] : memref<1x128xf32, #tpu.memory_space<vmem>>, vector<1x128xf32>
    %8 = vector.broadcast %7 : vector<1x128xf32> to vector<256x128xf32>
    %9 = arith.addf %6, %8 : vector<256x128xf32>
    %cst_7 = arith.constant 0.000000e+00 : f32
    %10 = vector.broadcast %cst_7 : f32 to vector<256x128xf32>
    %11 = arith.maximumf %9, %10 : vector<256x128xf32>
    %cst_8 = arith.constant 9.99999997E-7 : f32
    %12 = vector.broadcast %cst_8 : f32 to vector<256x128xf32>
    %13 = arith.maximumf %11, %12 : vector<256x128xf32>
    %14 = arith.mulf %13, %13 : vector<256x128xf32>
    %15 = arith.mulf %14, %13 : vector<256x128xf32>
    %c0_9 = arith.constant 0 : index
    %c0_10 = arith.constant 0 : index
    %16 = vector.load %arg7[%c0_9, %c0_10] : memref<1x128xf32, #tpu.memory_space<vmem>>, vector<1x128xf32>
    %cst_11 = arith.constant dense<0.000000e+00> : vector<128xf32>
    %17 = vector.multi_reduction <add>, %15, %cst_11 [0] : vector<256x128xf32> to vector<128xf32>
    %18 = vector.shape_cast %17 : vector<128xf32> to vector<1x128xf32>
    %19 = arith.addf %16, %18 : vector<1x128xf32>
    %c0_12 = arith.constant 0 : index
    %c0_13 = arith.constant 0 : index
    %20 = vector.load %arg7[%c0_12, %c0_13] : memref<1x128xf32, #tpu.memory_space<vmem>>, vector<1x128xf32>
    tpu.vector_store %arg7[%c0_12, %c0_13], %19 {strides = array<i32>} : memref<1x128xf32, #tpu.memory_space<vmem>>, vector<1x128xf32>,
    %c0_i32_14 = arith.constant 0 : i32
    %21 = arith.cmpi eq, %arg1, %c0_i32_14 : i32
    %22 = arith.extui %21 : i1 to i32
    %c0_i32_15 = arith.constant 0 : i32
    %23 = arith.cmpi ne, %22, %c0_i32_15 : i32
    scf.if %23 {
      %c0_16 = arith.constant 0 : index
      %c0_17 = arith.constant 0 : index
      %24 = vector.load %arg7[%c0_16, %c0_17] : memref<1x128xf32, #tpu.memory_space<vmem>>, vector<1x128xf32>
      %cst_18 = arith.constant 3.906250e-03 : f32
      %25 = vector.broadcast %cst_18 : f32 to vector<1x128xf32>
      %26 = arith.mulf %24, %25 : vector<1x128xf32>
      %cst_19 = arith.constant 1.000000e-35 : f32
      %27 = vector.broadcast %cst_19 : f32 to vector<1x128xf32>
      %28 = arith.maximumf %26, %27 : vector<1x128xf32>
      %29 = math.log %28 : vector<1x128xf32>
      %cst_20 = arith.constant 0.333333343 : f32
      %30 = vector.broadcast %cst_20 : f32 to vector<1x128xf32>
      %31 = arith.mulf %29, %30 : vector<1x128xf32>
      %32 = math.exp %31 : vector<1x128xf32>
      %33 = tpu.iota {dimensions = array<i32: 1>} : vector<1x128xi32>
      %c32_i32 = arith.constant 32 : i32
      %34 = vector.broadcast %c32_i32 : i32 to vector<1x128xi32>
      %35 = arith.cmpi slt, %33, %34 : vector<1x128xi32>
      %cst_21 = arith.constant 0.000000e+00 : f32
      %36 = vector.broadcast %cst_21 : f32 to vector<1x128xf32>
      %37 = arith.select %35, %32, %36 : vector<1x128xi1>, vector<1x128xf32>
      %38 = arith.mulf %37, %37 : vector<1x128xf32>
      %cst_22 = arith.constant dense<0.000000e+00> : vector<1xf32>
      %39 = vector.multi_reduction <add>, %38, %cst_22 [1] : vector<1x128xf32> to vector<1xf32>
      %40 = vector.shape_cast %39 : vector<1xf32> to vector<1x1xf32>
      %cst_23 = arith.constant 1.000000e-24 : f32
      %41 = vector.broadcast %cst_23 : f32 to vector<1x1xf32>
      %42 = arith.maximumf %40, %41 : vector<1x1xf32>
      %43 = math.rsqrt %42 : vector<1x1xf32>
      %44 = vector.broadcast %43 : vector<1x1xf32> to vector<1x128xf32>
      %45 = arith.mulf %37, %44 : vector<1x128xf32>
      %c0_24 = arith.constant 0 : index
      %c0_25 = arith.constant 0 : index
      %c0_26 = arith.constant 0 : index
      %46 = vector.load %arg6[%c0_24, %c0_25, %c0_26] : memref<1x1x128xf32, #tpu.memory_space<vmem>>, vector<1x1x128xf32>
      %47 = vector.shape_cast %46 : vector<1x1x128xf32> to vector<1x128xf32>
      %48 = vector.shape_cast %45 : vector<1x128xf32> to vector<1x1x128xf32>
      tpu.vector_store %arg6[%c0_24, %c0_25, %c0_26], %48 {strides = array<i32>} : memref<1x1x128xf32, #tpu.memory_space<vmem>>, vector<1x1x128xf32>,
    } else {
    }
    return
  }
  func.func @transform_0(%arg0: i32, %arg1: i32) -> (i32, i32, i32) {
    %c0_i32 = arith.constant 0 : i32
    %c0_i32_0 = arith.constant 0 : i32
    return %arg0, %arg1, %c0_i32 : i32, i32, i32
  }
  func.func @transform_1(%arg0: i32, %arg1: i32) -> (i32, i32) {
    %c0_i32 = arith.constant 0 : i32
    %c0_i32_0 = arith.constant 0 : i32
    %c0_i32_1 = arith.constant 0 : i32
    return %c0_i32, %c0_i32_0 : i32, i32
  }
  func.func @transform_2(%arg0: i32, %arg1: i32) -> (i32, i32) {
    %c0_i32 = arith.constant 0 : i32
    %c0_i32_0 = arith.constant 0 : i32
    %c0_i32_1 = arith.constant 0 : i32
    return %c0_i32, %c0_i32_0 : i32, i32
  }
  func.func @transform_3(%arg0: i32, %arg1: i32) -> (i32, i32) {
    %c0_i32 = arith.constant 0 : i32
    %c0_i32_0 = arith.constant 0 : i32
    %c0_i32_1 = arith.constant 0 : i32
    return %c0_i32, %c0_i32_0 : i32, i32
  }
  func.func @transform_4(%arg0: i32, %arg1: i32) -> (i32, i32, i32) {
    %c0_i32 = arith.constant 0 : i32
    %c0_i32_0 = arith.constant 0 : i32
    %c0_i32_1 = arith.constant 0 : i32
    return %arg0, %c0_i32, %c0_i32_0 : i32, i32, i32
  }
}

</mosaic_0001>

<bundles_post_ra>
// kernel: siamese_forward.1
= control target key start
LH: loop header
LB: loop body
LE: loop exit
PB: predicated region body
PF: predicated region fallthrough
CT: control target
= control target key end

     0   :  { %s1070_s15 = smov 0   ;;  %s1072_s16 = smov 0   ;;  %s1213_s0 = inlined_call_operand.vmem [shape: bf16[4,256,128], index: 0, kind: input, shape index: {}]   ;;  %s1214_s1 = inlined_call_operand.vmem [shape: bf16[128,128], index: 1, kind: input, shape index: {}]   ;;  %s1215_s2 = inlined_call_operand.vmem [shape: f32[1,128], index: 2, kind: input, shape index: {}]   ;;  %s1216_s3 = inlined_call_operand.<no memory space> [shape: f32[1,1], index: 3, kind: input, shape index: {}]   ;;  %s1217_s4 = inlined_call_operand.vmem [shape: f32[4,1,128], index: 4, kind: output, shape index: {}]  }
   0x1   :  { %s1074_s17 = smov 0  }
   0x2 LB: > { %s27_s3 = sadd.s32 1, %s1038_s16  ;;  %p846_p0 = scmp.ge.s32.totalorder %s1042_s17, 1  ;;  %s1042_s17 = sphi %s1074_s17, %s15_s17   ;;  %s1038_s16 = sphi %s1072_s16, %s1219_s16   ;;  %s1034_s15 = sphi %s1070_s15, %s1218_s15  }
   0x3   : > { %p29_p1 = scmp.ge.s32.totalorder %s27_s3, 4  ;;  %p182_p2 = scmp.lt.s32.totalorder %s1042_s17, 5 }
   0x5   : > { %s1221_s3 = smov (%p29_p1, %s27_s3), 0  ;;  %p183_p3 = pnand %p846_p0, %p182_p2 }
   0x6   : > { %p211_p4 = scmp.lt.s32.totalorder (!%p183_p3), %s1034_s15, 3 }
   0x7   : > { %186 = sbr.rel (%p183_p3) target bundleno = 537 (0x219), region = 36 }
   0xc   : > { %v990_v0 = vld [vmem:[%s1214_s1 + $0x38] sm:$0xff]   ;;  %v991_v1 = vld [vmem:[%s1214_s1 + $0x30] sm:$0xff]   ;;  %s1223_s15 = smov (!%p211_p4, %s1034_s15), 3  ;;  %v992_v2 = vld [vmem:[%s1214_s1 + $0x28] sm:$0xff]   ;;  %v1044_v24 = vmov 0.0   ;;  %vm773_vm1 = vcmask 1040384  }
   0xd   : > { %901 = vmatprep.subr.bf16.mxu0 %v990_v0  ;;  %949 = vmatprep.subr.bf16.mxu1 %v990_v0  ;;  %s876_s24 = sshll.u32 %s1223_s15, 7  ;;  %v993_v3 = vld [vmem:[%s1214_s1 + $0x20] sm:$0xff]   ;;  %v994_v5 = vld [vmem:[%s1214_s1 + $0x18] sm:$0xff]   ;;  %v995_v7 = vld [vmem:[%s1214_s1 + $0x10] sm:$0xff]   ;;  %228 = vst [vmem:[#allocation2] sm:$0x1] %v1044_v24  ;;  %s222_s19 = scalar_lea.vmem %s1217_s4, %s1223_s15 }
   0xe   : > { %902 = vmatpush3.bf16.msra.mxu0 %v990_v0  ;;  %957 = vmatpush3.bf16.msra.mxu1 %v990_v0  ;;  %s1103_s27 = scalar_lea.vmem %s1213_s0, %s876_s24  ;;  %v996_v8 = vld [vmem:[%s1214_s1 + $0x8] sm:$0xff]   ;;  %v997_v9 = vld [vmem:[%s1214_s1] sm:$0xff]  }
   0xf   : > { %903 = vmatprep.subr.bf16.mxu0 %v991_v1  ;;  %950 = vmatprep.subr.bf16.mxu1 %v991_v1  ;;  %v998_v4 = vld [vmem:[%s1103_s27] sm:$0xff]   ;;  %v999_v10 = vld [vmem:[%s1103_s27 + $0x8] sm:$0xff]   ;;  %v1000_v12 = vld [vmem:[%s1103_s27 + $0x10] sm:$0xff]  }
  0x10   : > { %917 = vmatprep.mubr.bf16.mxu0 %v998_v4  ;;  %v1005_v6 = vld [vmem:[%s1103_s27 + $0x40] sm:$0xff]   ;;  %v1007_v11 = vld [vmem:[%s1103_s27 + $0x48] sm:$0xff]   ;;  %v1008_v13 = vld [vmem:[%s1103_s27 + $0x50] sm:$0xff]  }
  0x11   : > { %933 = vmatprep.mubr.bf16.mxu1 %v1005_v6  ;;  %v1001_v14 = vld [vmem:[%s1103_s27 + $0x18] sm:$0xff]   ;;  %v1002_v16 = vld [vmem:[%s1103_s27 + $0x20] sm:$0xff]   ;;  %v1003_v18 = vld [vmem:[%s1103_s27 + $0x28] sm:$0xff]  }
  0x12   : > { %904 = vmatpush3.bf16.msra.mxu0 %v991_v1  ;;  %958 = vmatpush3.bf16.msra.mxu1 %v991_v1  ;;  %v1009_v15 = vld [vmem:[%s1103_s27 + $0x58] sm:$0xff]   ;;  %v1010_v17 = vld [vmem:[%s1103_s27 + $0x60] sm:$0xff]   ;;  %v1011_v19 = vld [vmem:[%s1103_s27 + $0x68] sm:$0xff]  }
  0x13   : > { %905 = vmatprep.subr.bf16.mxu0 %v992_v2  ;;  %951 = vmatprep.subr.bf16.mxu1 %v992_v2  ;;  %v1004_v20 = vld [vmem:[%s1103_s27 + $0x30] sm:$0xff]   ;;  %v1006_v22 = vld [vmem:[%s1103_s27 + $0x38] sm:$0xff]   ;;  %v1139_v25 = vld [vmem:[%s1215_s2] ss:$0 sm:$0xff] }
  0x14   : > { %v1012_v21 = vld [vmem:[%s1103_s27 + $0x70] sm:$0xff]   ;;  %v1013_v23 = vld [vmem:[%s1103_s27 + $0x78] sm:$0xff]  }
  0x16   : > { %906 = vmatpush3.bf16.msra.mxu0 %v992_v2  ;;  %959 = vmatpush3.bf16.msra.mxu1 %v992_v2 }
  0x17   : > { %907 = vmatprep.subr.bf16.mxu0 %v993_v3  ;;  %952 = vmatprep.subr.bf16.mxu1 %v993_v3 }
  0x1a   : > { %908 = vmatpush3.bf16.msra.mxu0 %v993_v3  ;;  %960 = vmatpush3.bf16.msra.mxu1 %v993_v3 }
  0x1b   : > { %909 = vmatprep.subr.bf16.mxu0 %v994_v5  ;;  %953 = vmatprep.subr.bf16.mxu1 %v994_v5 }
  0x1e   : > { %910 = vmatpush3.bf16.msra.mxu0 %v994_v5  ;;  %961 = vmatpush3.bf16.msra.mxu1 %v994_v5 }
  0x1f   : > { %911 = vmatprep.subr.bf16.mxu0 %v995_v7  ;;  %954 = vmatprep.subr.bf16.mxu1 %v995_v7 }
  0x22   : > { %912 = vmatpush3.bf16.msra.mxu0 %v995_v7  ;;  %962 = vmatpush3.bf16.msra.mxu1 %v995_v7 }
  0x23   : > { %913 = vmatprep.subr.bf16.mxu0 %v996_v8  ;;  %955 = vmatprep.subr.bf16.mxu1 %v996_v8 }
  0x26   : > { %914 = vmatpush3.bf16.msra.mxu0 %v996_v8  ;;  %963 = vmatpush3.bf16.msra.mxu1 %v996_v8 }
  0x27   : > { %915 = vmatprep.subr.bf16.mxu0 %v997_v9  ;;  %956 = vmatprep.subr.bf16.mxu1 %v997_v9 }
  0x2a   : > { %916 = vmatpush3.bf16.msra.mxu0 %v997_v9  ;;  %964 = vmatpush3.bf16.msra.mxu1 %v997_v9 }
  0x2d   : > { %918 = vmatmul.mubr.bf16.vlgmr.msra.gmra.mxu0 %v999_v10  ;;  %934 = vmatmul.mubr.bf16.vlgmr.msra.gmra.mxu1 %v1007_v11 }
  0x2e   : > { %921 = vmatprep.mubr.bf16.mxu0 %v1000_v12  ;;  %937 = vmatprep.mubr.bf16.mxu1 %v1008_v13 }
  0x35   : > { %922 = vmatmul.mubr.bf16.gmra.mxu0 %v1001_v14  ;;  %938 = vmatmul.mubr.bf16.gmra.mxu1 %v1009_v15 }
  0x36   : > { %925 = vmatprep.mubr.bf16.mxu0 %v1002_v16  ;;  %941 = vmatprep.mubr.bf16.mxu1 %v1010_v17 }
  0x3d   : > { %926 = vmatmul.mubr.bf16.gmra.mxu0 %v1003_v18  ;;  %942 = vmatmul.mubr.bf16.gmra.mxu1 %v1011_v19 }
  0x3e   : > { %929 = vmatprep.mubr.bf16.mxu0 %v1004_v20  ;;  %945 = vmatprep.mubr.bf16.mxu1 %v1012_v21 }
  0x45   : > { %930 = vmatmul.mubr.bf16.gmra.mxu0 %v1006_v22  ;;  %946 = vmatmul.mubr.bf16.gmra.mxu1 %v1013_v23 }
  0xed   : > { %v919_v26 = vpop.f32.mrf.mxu0  ;;  %v1141_v27 = vpop.f32.mrf.mxu1 }
  0xee   : > { %v471_v28 = vadd.f32 %v919_v26, %v1139_v25 }
  0xef   : > { %v462_v29 = vpop.f32.mrf.mxu0  ;;  %v1144_v30 = vpop.f32.mrf.mxu1 }
  0xf0   : > { %v463_v31 = vadd.f32 %v1139_v25, %v462_v29  ;;  %v591_v34 = vmax.f32 %v471_v28, 0.0 }
  0xf1   : > { %v920_v32 = vpop.f32.mrf.mxu0  ;;  %v1147_v33 = vpop.f32.mrf.mxu1 }
  0xf2   : > { %v589_v35 = vmax.f32 %v463_v31, 0.0  ;;  %v474_v36 = vadd.f32 %v920_v32, %v1139_v25  ;;  %v623_v44 = vmax.f32 %v591_v34, 1e-06 }
  0xf3   : > { %v465_v37 = vpop.f32.mrf.mxu0  ;;  %v1150_v38 = vpop.f32.mrf.mxu1 }
  0xf4   : > { %v621_v39 = vmax.f32 %v589_v35, 1e-06  ;;  %v592_v40 = vmax.f32 %v474_v36, 0.0  ;;  %v466_v41 = vadd.f32 %v1139_v25, %v465_v37  ;;  %v655_v55 = vmul.f32 %v623_v44, %v623_v44 }
  0xf5   : > { %v923_v42 = vpop.f32.mrf.mxu0  ;;  %v1153_v43 = vpop.f32.mrf.mxu1 }
  0xf6   : > { %v590_v45 = vmax.f32 %v466_v41, 0.0  ;;  %v653_v46 = vmul.f32 %v621_v39, %v621_v39  ;;  %v624_v47 = vmax.f32 %v592_v40, 1e-06  ;;  %v487_v48 = vadd.f32 %v923_v42, %v1139_v25 }
  0xf7   : > { %v478_v49 = vpop.f32.mrf.mxu0  ;;  %v1157_v54 = vpop.f32.mrf.mxu1  ;;  %v687_v5 = vmul.f32 %v655_v55, %v623_v44 }
  0xf8   : > { %v622_v50 = vmax.f32 %v590_v45, 1e-06  ;;  %v479_v51 = vadd.f32 %v1139_v25, %v478_v49  ;;  %v595_v52 = vmax.f32 %v487_v48, 0.0  ;;  %v685_v59 = vmul.f32 %v653_v46, %v621_v39 }
  0xf9   : > { %v924_v53 = vpop.f32.mrf.mxu0  ;;  %v656_v60 = vmul.f32 %v624_v47, %v624_v47  ;;  %v1161_v4 = vpop.f32.mrf.mxu1 }
  0xfa   : > { %v654_v56 = vmul.f32 %v622_v50, %v622_v50  ;;  %v593_v57 = vmax.f32 %v479_v51, 0.0  ;;  %v490_v58 = vadd.f32 %v924_v53, %v1139_v25  ;;  %v627_v2 = vmax.f32 %v595_v52, 1e-06 }
  0xfb   : > { %v481_v61 = vpop.f32.mrf.mxu0  ;;  %v688_v12 = vmul.f32 %v656_v60, %v624_v47  ;;  %v1165_v19 = vpop.f32.mrf.mxu1  ;;  %v527_v53 = vadd.f32 %v1139_v25, %v1144_v30  ;;  %v535_v30 = vadd.f32 %v1141_v27, %v1139_v25  ;;  %v543_v27 = vadd.f32 %v1139_v25, %v1157_v54 }
  0xfc   : > { %v686_v62 = vmul.f32 %v654_v56, %v622_v50  ;;  %v625_v63 = vmax.f32 %v593_v57, 1e-06  ;;  %v596_v0 = vmax.f32 %v490_v58, 0.0  ;;  %v482_v1 = vadd.f32 %v1139_v25, %v481_v61 }
  0xfd   : > { %v927_v3 = vpop.f32.mrf.mxu0  ;;  %v659_v15 = vmul.f32 %v627_v2, %v627_v2  ;;  %v1169_v39 = vpop.f32.mrf.mxu1 }
  0xfe   : > { %v718_v6 = vadd.f32 %v686_v62, %v685_v59  ;;  %v657_v7 = vmul.f32 %v625_v63, %v625_v63  ;;  %v594_v8 = vmax.f32 %v482_v1, 0.0  ;;  %v628_v9 = vmax.f32 %v596_v0, 1e-06 }
  0xff   : > { %v503_v10 = vadd.f32 %v927_v3, %v1139_v25  ;;  %v494_v11 = vpop.f32.mrf.mxu0  ;;  %v691_v40 = vmul.f32 %v659_v15, %v627_v2  ;;  %v558_v56 = vpop.f32.mrf.mxu1  ;;  %v530_v0 = vadd.f32 %v1139_v25, %v1150_v38  ;;  %v538_v38 = vadd.f32 %v1147_v33, %v1139_v25 }
 0x100   : > { %v719_v13 = vadd.f32 %v718_v6, %v687_v5  ;;  %v626_v14 = vmax.f32 %v594_v8, 1e-06  ;;  %v495_v17 = vadd.f32 %v1139_v25, %v494_v11  ;;  %v689_v20 = vmul.f32 %v657_v7, %v625_v63 }
 0x101   : > { %v599_v16 = vmax.f32 %v503_v10, 0.0  ;;  %v928_v18 = vpop.f32.mrf.mxu0  ;;  %v660_v24 = vmul.f32 %v628_v9, %v628_v9  ;;  %v605_v7 = vmax.f32 %v527_v53, 0.0  ;;  %v606_v15 = vmax.f32 %v530_v0, 0.0 }
 0x102   : > { %v720_v21 = vadd.f32 %v719_v13, %v688_v12  ;;  %v658_v22 = vmul.f32 %v626_v14, %v626_v14  ;;  %v506_v23 = vadd.f32 %v928_v18, %v1139_v25  ;;  %v597_v26 = vmax.f32 %v495_v17, 0.0 }
 0x103   : > { %v497_v28 = vpop.f32.mrf.mxu0  ;;  %v631_v35 = vmax.f32 %v599_v16, 1e-06  ;;  %v692_v47 = vmul.f32 %v660_v24, %v628_v9  ;;  %v944_v9 = vpop.f32.mrf.mxu1 }
 0x104   : > { %v721_v29 = vadd.f32 %v720_v21, %v689_v20  ;;  %v690_v31 = vmul.f32 %v658_v22, %v626_v14  ;;  %v600_v32 = vmax.f32 %v506_v23, 0.0  ;;  %v498_v34 = vadd.f32 %v1139_v25, %v497_v28 }
 0x105   : > { %v629_v36 = vmax.f32 %v597_v26, 1e-06  ;;  %v931_v37 = vpop.f32.mrf.mxu0  ;;  %v663_v51 = vmul.f32 %v631_v35, %v631_v35  ;;  %v607_v21 = vmax.f32 %v535_v30, 0.0  ;;  %v637_v22 = vmax.f32 %v605_v7, 1e-06  ;;  %v561_v23 = vpop.f32.mrf.mxu1 }
 0x106   : > { %v722_v41 = vadd.f32 %v721_v29, %v690_v31  ;;  %v598_v42 = vmax.f32 %v498_v34, 0.0  ;;  %v519_v44 = vadd.f32 %v931_v37, %v1139_v25  ;;  %v632_v49 = vmax.f32 %v600_v32, 1e-06 }
 0x107   : > { %v661_v45 = vmul.f32 %v629_v36, %v629_v36  ;;  %v510_v46 = vpop.f32.mrf.mxu0  ;;  %v695_v10 = vmul.f32 %v663_v51, %v631_v35  ;;  %v608_v31 = vmax.f32 %v538_v38, 0.0  ;;  %v638_v32 = vmax.f32 %v606_v15, 1e-06 }
 0x108   : > { %v723_v48 = vadd.f32 %v722_v41, %v691_v40  ;;  %v630_v50 = vmax.f32 %v598_v42, 1e-06  ;;  %v511_v52 = vadd.f32 %v1139_v25, %v510_v46  ;;  %v603_v60 = vmax.f32 %v519_v44, 0.0  ;;  %v947_v41 = vpop.f32.mrf.mxu1 }
 0x109   : > { %v932_v55 = vpop.f32.mrf.mxu0  ;;  %v693_v57 = vmul.f32 %v661_v45, %v629_v36  ;;  %v664_v2 = vmul.f32 %v632_v49, %v632_v49  ;;  %v546_v36 = vadd.f32 %v1139_v25, %v1165_v19  ;;  %v639_v37 = vmax.f32 %v607_v21, 1e-06 }
 0x10a   : > { %v724_v58 = vadd.f32 %v723_v48, %v692_v47  ;;  %v662_v59 = vmul.f32 %v630_v50, %v630_v50  ;;  %v601_v61 = vmax.f32 %v511_v52, 0.0  ;;  %v522_v62 = vadd.f32 %v932_v55, %v1139_v25  ;;  %v574_v19 = vpop.f32.mrf.mxu1 }
 0x10b   : > { %v513_v63 = vpop.f32.mrf.mxu0  ;;  %v635_v12 = vmax.f32 %v603_v60, 1e-06  ;;  %v696_v16 = vmul.f32 %v664_v2, %v632_v49  ;;  %v551_v40 = vadd.f32 %v1153_v43, %v1139_v25  ;;  %v669_v54 = vmul.f32 %v637_v22, %v637_v22 }
 0x10c   : > { %v725_v1 = vadd.f32 %v724_v58, %v693_v57  ;;  %v694_v3 = vmul.f32 %v662_v59, %v630_v50  ;;  %v514_v5 = vadd.f32 %v1139_v25, %v513_v63  ;;  %v633_v6 = vmax.f32 %v601_v61, 1e-06  ;;  %v948_v2 = vpop.f32.mrf.mxu1 }
 0x10d   : > { %v604_v8 = vmax.f32 %v522_v62, 0.0  ;;  %v667_v24 = vmul.f32 %v635_v12, %v635_v12  ;;  %v609_v45 = vmax.f32 %v543_v27, 0.0  ;;  %v640_v46 = vmax.f32 %v608_v31, 1e-06 }
 0x10e   : > { %v726_v11 = vadd.f32 %v725_v1, %v694_v3  ;;  %v602_v13 = vmax.f32 %v514_v5, 0.0  ;;  %v665_v14 = vmul.f32 %v633_v6, %v633_v6  ;;  %v554_v47 = vadd.f32 %v1161_v4, %v1139_v25  ;;  %v577_v38 = vpop.f32.mrf.mxu1 }
 0x10f   : > { %v636_v18 = vmax.f32 %v604_v8, 1e-06  ;;  %v699_v42 = vmul.f32 %v667_v24, %v635_v12  ;;  %v670_v50 = vmul.f32 %v638_v32, %v638_v32  ;;  %v610_v51 = vmax.f32 %v546_v36, 0.0 }
 0x110   : > { %v727_v17 = vadd.f32 %v726_v11, %v695_v10  ;;  %v634_v20 = vmax.f32 %v602_v13, 1e-06  ;;  %v697_v26 = vmul.f32 %v665_v14, %v633_v6  ;;  %v671_v52 = vmul.f32 %v639_v37, %v639_v37 }
 0x111   : > { %v668_v35 = vmul.f32 %v636_v18, %v636_v18  ;;  %v611_v53 = vmax.f32 %v551_v40, 0.0  ;;  %v701_v55 = vmul.f32 %v669_v54, %v637_v22  ;;  %v641_v58 = vmax.f32 %v609_v45, 1e-06 }
 0x112   : > { %v728_v28 = vadd.f32 %v727_v17, %v696_v16  ;;  %v666_v29 = vmul.f32 %v634_v20, %v634_v20  ;;  %v559_v43 = vadd.f32 %v1139_v25, %v558_v56  ;;  %v672_v59 = vmul.f32 %v640_v46, %v640_v46 }
 0x113   : > { %v700_v48 = vmul.f32 %v668_v35, %v636_v18  ;;  %v612_v60 = vmax.f32 %v554_v47, 0.0  ;;  %v702_v61 = vmul.f32 %v670_v50, %v638_v32  ;;  %v642_v63 = vmax.f32 %v610_v51, 1e-06 }
 0x114   : > { %v729_v34 = vadd.f32 %v728_v28, %v697_v26  ;;  %v698_v33 = vmul.f32 %v666_v29, %v634_v20  ;;  %v562_v0 = vadd.f32 %v1139_v25, %v561_v23  ;;  %v643_v4 = vmax.f32 %v611_v53, 1e-06 }
 0x115   : > { %v567_v1 = vadd.f32 %v1169_v39, %v1139_v25  ;;  %v703_v3 = vmul.f32 %v671_v52, %v639_v37  ;;  %v673_v30 = vmul.f32 %v641_v58, %v641_v58  ;;  %v613_v6 = vmax.f32 %v559_v43, 0.0 }
 0x116   : > { %v730_v44 = vadd.f32 %v729_v34, %v698_v33  ;;  %v644_v7 = vmax.f32 %v612_v60, 1e-06  ;;  %v570_v8 = vadd.f32 %v944_v9, %v1139_v25  ;;  %v704_v56 = vmul.f32 %v672_v59, %v640_v46 }
 0x117   : > { %v674_v11 = vmul.f32 %v642_v63, %v642_v63  ;;  %v614_v12 = vmax.f32 %v562_v0, 0.0  ;;  %v675_v13 = vmul.f32 %v643_v4, %v643_v4  ;;  %v615_v14 = vmax.f32 %v567_v1, 0.0 }
 0x118   : > { %v731_v49 = vadd.f32 %v730_v44, %v699_v42  ;;  %v705_v15 = vmul.f32 %v673_v30, %v641_v58  ;;  %v645_v17 = vmax.f32 %v613_v6, 1e-06  ;;  %v575_v39 = vadd.f32 %v1139_v25, %v574_v19 }
 0x119   : > { %v676_v18 = vmul.f32 %v644_v7, %v644_v7  ;;  %v616_v20 = vmax.f32 %v570_v8, 0.0  ;;  %v706_v22 = vmul.f32 %v674_v11, %v642_v63  ;;  %v646_v27 = vmax.f32 %v614_v12, 1e-06  ;;  %v717_v8 = vld [vmem:[#allocation2] sm:$0x1] }
 0x11a   : > { %v732_v57 = vadd.f32 %v731_v49, %v700_v48  ;;  %v578_v23 = vadd.f32 %v1139_v25, %v577_v38  ;;  %v707_v9 = vmul.f32 %v675_v13, %v643_v4  ;;  %v647_v24 = vmax.f32 %v615_v14, 1e-06 }
 0x11b   : > { %v677_v28 = vmul.f32 %v645_v17, %v645_v17  ;;  %v583_v29 = vadd.f32 %v947_v41, %v1139_v25  ;;  %v617_v31 = vmax.f32 %v575_v39, 0.0  ;;  %v708_v32 = vmul.f32 %v676_v18, %v644_v7 }
 0x11c   : > { %v733_v62 = vadd.f32 %v732_v57, %v701_v55  ;;  %v648_v34 = vmax.f32 %v616_v20, 1e-06  ;;  %v678_v33 = vmul.f32 %v646_v27, %v646_v27  ;;  %v586_v36 = vadd.f32 %v948_v2, %v1139_v25 }
 0x11d   : > { %v618_v37 = vmax.f32 %v578_v23, 0.0  ;;  %v679_v40 = vmul.f32 %v647_v24, %v647_v24  ;;  %v709_v42 = vmul.f32 %v677_v28, %v645_v17  ;;  %v619_v44 = vmax.f32 %v583_v29, 0.0 }
 0x11e   : > { %v734_v5 = vadd.f32 %v733_v62, %v702_v61  ;;  %v649_v45 = vmax.f32 %v617_v31, 1e-06  ;;  %v680_v46 = vmul.f32 %v648_v34, %v648_v34  ;;  %v710_v48 = vmul.f32 %v678_v33, %v646_v27 }
 0x11f   : > { %v620_v49 = vmax.f32 %v586_v36, 0.0  ;;  %v650_v50 = vmax.f32 %v618_v37, 1e-06  ;;  %v711_v51 = vmul.f32 %v679_v40, %v647_v24  ;;  %v651_v52 = vmax.f32 %v619_v44, 1e-06 }
 0x120   : > { %v735_v10 = vadd.f32 %v734_v5, %v703_v3  ;;  %v681_v53 = vmul.f32 %v649_v45, %v649_v45  ;;  %v712_v19 = vmul.f32 %v680_v46, %v648_v34  ;;  %v768_v17 = vlaneseq }
 0x121   : > { %v652_v57 = vmax.f32 %v620_v49, 1e-06  ;;  %v682_v58 = vmul.f32 %v650_v50, %v650_v50  ;;  %v683_v25 = vmul.f32 %v651_v52, %v651_v52 }
 0x122   : > { %v736_v16 = vadd.f32 %v735_v10, %v704_v56  ;;  %v713_v43 = vmul.f32 %v681_v53, %v649_v45  ;;  %v769_v39 = vand.u32 127, %v768_v17 }
 0x123   : > { %v684_v61 = vmul.f32 %v652_v57, %v652_v57  ;;  %v714_v62 = vmul.f32 %v682_v58, %v650_v50  ;;  %v715_v63 = vmul.f32 %v683_v25, %v651_v52 }
 0x124   : > { %v737_v21 = vadd.f32 %v736_v16, %v705_v15  ;;  %vm770_vm0 = vcmp.lt.s32.totalorder %v769_v39, 32 }
 0x125   : > { %v716_v4 = vmul.f32 %v684_v61, %v652_v57 }
 0x126   : > { %v738_v26 = vadd.f32 %v737_v21, %v706_v22 }
 0x128   : > { %v739_v35 = vadd.f32 %v738_v26, %v707_v9 }
 0x12a   : > { %v740_v54 = vadd.f32 %v739_v35, %v708_v32 }
 0x12c   : > { %v741_v47 = vadd.f32 %v740_v54, %v709_v42 }
 0x12e   : > { %v742_v41 = vadd.f32 %v741_v47, %v710_v48 }
 0x130   : > { %v743_v55 = vadd.f32 %v742_v41, %v711_v51 }
 0x132   : > { %v744_v59 = vadd.f32 %v743_v55, %v712_v19 }
 0x134   : > { %v745_v60 = vadd.f32 %v744_v59, %v713_v43 }
 0x136   : > { %v746_v0 = vadd.f32 %v745_v60, %v714_v62 }
 0x138   : > { %v747_v1 = vadd.f32 %v746_v0, %v715_v63 }
 0x13a   : > { %v748_v2 = vadd.f32 %v747_v1, %v716_v4 }
 0x13c   : > { %v749_v3 = vrot.slane %v748_v2, 4 }
 0x13e   : > { %v750_v5 = vadd.f32 %v749_v3, %v748_v2 }
 0x140   : > { %v751_v30 = vrot.slane %v750_v5, 2 }
 0x142   : > { %v752_v6 = vadd.f32 %v751_v30, %v750_v5 }
 0x144   : > { %v753_v7 = vrot.slane %v752_v6, 1 }
 0x146   : > { %v754_v56 = vadd.f32 %v753_v7, %v752_v6 }
 0x148   : > { %v755_v10 = vadd.f32 %v754_v56, %v717_v8 }
 0x14a   : > { %756 = vst [vmem:[#allocation2] sm:$0x1] %v755_v10 }
 0x151   : > { %v760_v11 = vld [vmem:[#allocation2] sm:$0x1] }
 0x152   : > { %v761_v12 = vmul.f32 0.00390625, %v760_v11 }
 0x154   : > { %v762_v13 = vmax.f32 %v761_v12, 1e-35 }
 0x156   : > { %1014 = vlog2.f32 %v762_v13 }
 0x163   : > { %v1015_v14 = vpop.eup %1014 }
 0x164   : > { %v764_v38 = vmul.f32 0.6931472, %v1015_v14 }
 0x166   : > { %v765_v15 = vmul.f32 0.33333334, %v764_v38 }
 0x168   : > { %v766_v16 = vmul.f32 1.442695, %v765_v15 }
 0x16a   : > { %1016 = vpow2.f32 %v766_v16 }
 0x177   : > { %v1017_v18 = vpop.eup %1016 }
 0x178   : > { %v771_v20 = vsel %vm770_vm0, %v1017_v18, 0.0 }
 0x179   : > { %v772_v21 = vmul.f32 %v771_v20, %v771_v20 }
 0x17b   : > { %v774_v22 = vsel %vm773_vm1, %v772_v21, 0.0 }
 0x17c   : > { %775 = vadd.xlane.f32.xlu0 %v774_v22 }
 0x205   : > { %v776_v27 = vpop.xlane.xlu0 %775 }
 0x206   : > { %v777_v23 = vmax.f32 %v776_v27, 1e-24 }
 0x208   : > { %1018 = vrsqrt.f32 %v777_v23 }
 0x215   : > { %v1019_v9 = vpop.eup %1018 }
 0x216   : > { %v779_v24 = vmul.f32 %v1019_v9, %v771_v20 }
 0x218   : > { %780 = vst [vmem:[%s222_s19] sm:$0x1] %v779_v24 }
 0x219 PF: > { %s15_s17 = sadd.s32 1, %s1042_s17   ;;  %s1218_s15 = smov %s1038_s16 }
 0x21a   : > { %p12_p5 = scmp.ge.s32.totalorder %s15_s17, 6   ;;  %s1219_s16 = smov %s1221_s3 }
 0x21c   :  { %14 = sbr.rel (!%p12_p5) target bundleno = 2 (0x2), region = 74 }

</bundles_post_ra>
